<compile_context>
chip_gen: v5e
topology: v5e:2x2
jax: 0.10.0
libtpu: 0.0.40
codegen_flags: <defaults>
</compile_context>

<pallas_src>
import jax
import jax.numpy as jnp
from jax.experimental import pallas as pl
from jax.experimental.pallas import tpu as pltpu


# ----------------------------------------------------------------------------
# Kernel: masked mean pooling + v_head projection, accumulated over S tiles.
#
#   score_t          = h_t . w                       (MXU, f32 accumulate)
#   partial_acc[p,b] += sum_s mask * score           (this split's S range)
#   partial_cnt[p,b] += sum_s mask
# ----------------------------------------------------------------------------
def _reward_masked_kernel(h_ref, mask_ref, w_ref, pacc_ref, pcnt_ref):
    s = pl.program_id(2)

    @pl.when(s == 0)
    def _init():
        pacc_ref[...] = jnp.zeros_like(pacc_ref)
        pcnt_ref[...] = jnp.zeros_like(pcnt_ref)

    bt, st, hdim = h_ref.shape
    # Per-token projection on the MXU: no f32 upcast of the h tile and no
    # broadcast of w over (Bt, St, H).  (Bt*St, H) . (1, H)^T -> (Bt*St, 1).
    h2d = h_ref[...].reshape(bt * st, hdim)
    scores = jax.lax.dot_general(
        h2d, w_ref[...],
        dimension_numbers=(((1,), (1,)), ((), ())),
        preferred_element_type=jnp.float32,
    ).reshape(bt, st, 1)

    m = mask_ref[...]                                    # (Bt, St, 1) f32
    pacc_ref[...] += jnp.sum(scores * m, axis=1)[None]   # (1, Bt, 1)
    pcnt_ref[...] += jnp.sum(m, axis=1)[None]            # (1, Bt, 1)


# ----------------------------------------------------------------------------
# Generation-aware budgets and tile-size selection
# ----------------------------------------------------------------------------
def _generation_budgets():
    """(h-tile byte target, vmem_limit_bytes), chosen per TPU generation."""
    vmem_bytes = None
    try:
        vmem_bytes = int(pltpu.get_tpu_info().vmem_capacity_bytes)
    except Exception:   # unknown platform / API mismatch -> be conservative
        vmem_bytes = None
    if vmem_bytes is not None and vmem_bytes >= 100 * 1024 * 1024:
        # v5e / v6e: 128 MiB VMEM, lower HBM BW -> large tiles amortize best.
        return 16 * 1024 * 1024, 96 * 1024 * 1024
    # v7x (64 MiB physical VMEM) or unknown: stay well under the physical cap.
    return 12 * 1024 * 1024, 48 * 1024 * 1024


def _pick_batch_tile(B):
    # Output block's sublane dim (Bt) must be a multiple of 8 or the full B.
    # Prefer >= 2 batch tiles so the "parallel" B axis can shard across v7x's
    # two TensorCores whenever B allows it.
    if B >= 16 and B % 8 == 0:
        return 8
    return B


def _pick_seq_tile(S, Bt, H, itemsize, target_bytes):
    """Returns (S_padded, St).  St always divides S_padded and is layout-legal.

    The mask is passed as (B, S, 1), so St only needs 8 (f32) / 16 (bf16)
    granularity -- never falls back to a full-sequence tile when the budget
    cannot fit one.
    """
    gran = 8 if itemsize >= 4 else 32 // itemsize        # f32: 8, bf16: 16
    row_bytes = max(1, Bt * H * itemsize)
    cap = max(1, target_bytes // row_bytes)              # tokens per h tile
    if S <= cap:
        return S, S                                       # one tile fits budget
    s_pad = ((S + gran - 1) // gran) * gran               # make granule tiles possible
    st = max(gran, (min(cap, s_pad) // gran) * gran)
    while st > gran and s_pad % st != 0:
        st -= gran
    return s_pad, st


# ----------------------------------------------------------------------------
# Wrapper
# ----------------------------------------------------------------------------
def reward_model_head(hidden_states, v_head_weight, attention_mask=None, *,
                      target_tile_bytes=None, vmem_limit_bytes=None):
    """Pallas-backed reward head (masked mean pooling + v_head linear).

    hidden_states : (B, S, H) float32 or bfloat16
    v_head_weight : (1, H)              (torch.nn.Linear(H, 1, bias=False).weight)
    attention_mask: (B, S) or None
    returns       : (B, 1) float32
    """
    B, S, H = hidden_states.shape

    if attention_mask is None:
        # Last-token projection is a tiny (B, H) matvec: kernel-launch overhead
        # would dominate, so leave it to XLA (per perf review).
        last = hidden_states[:, -1, :].astype(jnp.float32)
        return last @ v_head_weight.astype(jnp.float32).T

    tile_target, vmem_limit = _generation_budgets()
    if target_tile_bytes is not None:
        tile_target = target_tile_bytes
    if vmem_limit_bytes is not None:
        vmem_limit = vmem_limit_bytes

    itemsize = jnp.dtype(hidden_states.dtype).itemsize
    Bt = _pick_batch_tile(B)
    Sp, St = _pick_seq_tile(S, Bt, H, itemsize, tile_target)

    # Mask as (B, S, 1): last block dim is the full array dim, so St only needs
    # sublane (8/16) granularity instead of 128.
    mask3 = attention_mask.astype(jnp.float32).reshape(B, S, 1)
    h = hidden_states
    if Sp != S:
        # Zero-padded tokens carry zero mask -> masked sum and count unchanged.
        pad = Sp - S
        h = jnp.pad(h, ((0, 0), (0, pad), (0, 0)))
        mask3 = jnp.pad(mask3, ((0, 0), (0, pad), (0, 0)))

    nb = B // Bt
    s_tiles = Sp // St
    # Split the S reduction across two "parallel" grid slots so both v7x
    # TensorCores get work even when the batch axis has a single tile.
    n_split = 2 if (nb == 1 and s_tiles >= 2 and s_tiles % 2 == 0) else 1
    ns = s_tiles // n_split

    # Same dtype as h so bf16 inputs hit the bf16 MXU path (f32 accumulate).
    w = v_head_weight.astype(hidden_states.dtype)        # (1, H)

    def data_map(p, b, s):
        return (b, p * ns + s, 0)

    def out_map(p, b, s):
        return (p, b, 0)

    pacc, pcnt = pl.pallas_call(
        _reward_masked_kernel,
        out_shape=(
            jax.ShapeDtypeStruct((n_split, B, 1), jnp.float32),
            jax.ShapeDtypeStruct((n_split, B, 1), jnp.float32),
        ),
        grid=(n_split, nb, ns),                 # reduction axis (S tiles) last
        in_specs=[
            pl.BlockSpec((Bt, St, H), data_map),
            pl.BlockSpec((Bt, St, 1), data_map),
            pl.BlockSpec((1, H), lambda p, b, s: (0, 0)),   # resident weight
        ],
        out_specs=(
            pl.BlockSpec((1, Bt, 1), out_map),  # resident accumulator blocks
            pl.BlockSpec((1, Bt, 1), out_map),
        ),
        compiler_params=pltpu.CompilerParams(
            dimension_semantics=("parallel", "parallel", "arbitrary"),
            vmem_limit_bytes=vmem_limit,
        ),
    )(h, mask3, w)

    acc = jnp.sum(pacc, axis=0)                 # (B, 1)
    cnt = jnp.sum(pcnt, axis=0)                 # (B, 1)
    return acc / jnp.maximum(cnt, 1.0)          # clamp(min=1.0)


# ----------------------------------------------------------------------------
# Pure-JAX reference (mirrors the PyTorch forward head exactly)
# ----------------------------------------------------------------------------
def _reference_head(hidden_states, v_head_weight, attention_mask=None):
    hidden_states = hidden_states.astype(jnp.float32)
    w = v_head_weight.astype(jnp.float32)
    if attention_mask is not None:
        expanded = attention_mask[:, :, None].astype(jnp.float32)
        masked = hidden_states * expanded
        sum_hidden = jnp.sum(masked, axis=1)
        token_count = jnp.maximum(
            jnp.sum(attention_mask.astype(jnp.float32), axis=1, keepdims=True), 1.0)
        pooled = sum_hidden / token_count
        return pooled @ w.T
    last = hidden_states[:, -1, :]
    return last @ w.T


if __name__ == "__main__":
    # Small, deterministic synthetic setup.
    B, S, H = 2, 8, 128        # batch, seq, hidden_size
    VOCAB = 64

    key = jax.random.PRNGKey(0)
    k_ids, k_emb, k_w, k_big = jax.random.split(key, 4)

    # Synthetic "LM": token ids -> embedding lookup standing in for
    # outputs.hidden_states[-1] of the frozen base model.
    input_ids = jax.random.randint(k_ids, (B, S), 0, VOCAB)
    embedding = jax.random.normal(k_emb, (VOCAB, H), dtype=jnp.float32)
    hidden_states = embedding[input_ids]                     # (B, S, H)

    # v_head: Linear(H, 1, bias=False), weight ~ N(0, 0.01) as in __init__.
    v_head_weight = 0.01 * jax.random.normal(k_w, (1, H), dtype=jnp.float32)

    # Attention mask: first row full, second row padded after 5 tokens.
    attention_mask = jnp.array(
        [[1.0] * S,
         [1.0] * 5 + [0.0] * (S - 5)], dtype=jnp.float32)

    # --- f32 masked-pooling path ---------------------------------------------
    values_masked = jax.block_until_ready(
        reward_model_head(hidden_states, v_head_weight, attention_mask))
    ref_masked = _reference_head(hidden_states, v_head_weight, attention_mask)
    assert values_masked.shape == (B, 1)
    assert jnp.allclose(values_masked, ref_masked, atol=1e-4, rtol=1e-4)

    # --- no-mask (last token) path -------------------------------------------
    values_last = jax.block_until_ready(
        reward_model_head(hidden_states, v_head_weight, None))
    ref_last = _reference_head(hidden_states, v_head_weight, None)
    assert values_last.shape == (B, 1)
    assert jnp.allclose(values_last, ref_last, atol=1e-4, rtol=1e-4)

    # --- bf16 hidden states (half the HBM traffic; f32 MXU accumulation) -----
    h_bf16 = hidden_states.astype(jnp.bfloat16)
    values_bf16 = jax.block_until_ready(
        reward_model_head(h_bf16, v_head_weight, attention_mask))
    ref_bf16 = _reference_head(h_bf16, v_head_weight, attention_mask)
    assert jnp.allclose(values_bf16, ref_bf16, atol=2e-2, rtol=2e-2)

    # --- tiled + 2-way split path (forced small tile target so the S grid
    #     axis and the dual-TensorCore split are actually exercised) ----------
    B2, S2, H2 = 8, 256, 128
    k_h2, _ = jax.random.split(k_big)
    h2 = jax.random.normal(k_h2, (B2, S2, H2), dtype=jnp.bfloat16)
    lengths = jnp.array([256, 200, 128, 64, 17, 1, 256, 100])
    mask2 = (jnp.arange(S2)[None, :] < lengths[:, None]).astype(jnp.float32)
    values_tiled = jax.block_until_ready(
        reward_model_head(h2, v_head_weight, mask2, target_tile_bytes=64 * 1024))
    ref_tiled = _reference_head(h2, v_head_weight, mask2)
    assert values_tiled.shape == (B2, 1)
    assert jnp.allclose(values_tiled, ref_tiled, atol=2e-2, rtol=2e-2)

    print("KERNEL_OK")
</pallas_src>

<mosaic_0001>
module attributes {stable_mosaic.version = 11 : i64} {
  func.func @_reward_masked_kernel(%arg0: i32, %arg1: i32, %arg2: i32, %arg3: memref<2x8x128xf32, #tpu.memory_space<vmem>>, %arg4: memref<2x8x1xf32, #tpu.memory_space<vmem>>, %arg5: memref<1x128xf32, #tpu.memory_space<vmem>>, %arg6: memref<1x2x1xf32, #tpu.memory_space<vmem>>, %arg7: memref<1x2x1xf32, #tpu.memory_space<vmem>>) attributes {dimension_semantics = [#tpu.dimension_semantics<parallel>, #tpu.dimension_semantics<parallel>, #tpu.dimension_semantics<arbitrary>], iteration_bounds = array<i64: 1, 1, 1>, scalar_prefetch = 0 : i64, scratch_operands = 0 : i64, tpu.core_type = #tpu.core_type<tc>, window_params = [{transform_indices = @transform_0, window_bounds = array<i64: 2, 8, 128>}, {transform_indices = @transform_1, window_bounds = array<i64: 2, 8, 1>}, {pipeline_mode = #tpu.pipeline_mode<synchronous>, transform_indices = @transform_2, window_bounds = array<i64: 1, 128>}, {transform_indices = @transform_3, window_bounds = array<i64: 1, 2, 1>}, {transform_indices = @transform_4, window_bounds = array<i64: 1, 2, 1>}]} {
    %c0_i32 = arith.constant 0 : i32
    %0 = arith.cmpi eq, %arg2, %c0_i32 : i32
    %1 = arith.extui %0 : i1 to i32
    %c0_i32_0 = arith.constant 0 : i32
    %2 = arith.cmpi ne, %1, %c0_i32_0 : i32
    scf.if %2 {
      %cst_22 = arith.constant 0.000000e+00 : f32
      %20 = vector.broadcast %cst_22 : f32 to vector<1x2x1xf32>
      %c0_23 = arith.constant 0 : index
      %c0_24 = arith.constant 0 : index
      %c0_25 = arith.constant 0 : index
      %21 = vector.load %arg6[%c0_23, %c0_24, %c0_25] : memref<1x2x1xf32, #tpu.memory_space<vmem>>, vector<1x2x1xf32>
      tpu.vector_store %arg6[%c0_23, %c0_24, %c0_25], %20 {strides = array<i32>} : memref<1x2x1xf32, #tpu.memory_space<vmem>>, vector<1x2x1xf32>,
      %cst_26 = arith.constant 0.000000e+00 : f32
      %22 = vector.broadcast %cst_26 : f32 to vector<1x2x1xf32>
      %c0_27 = arith.constant 0 : index
      %c0_28 = arith.constant 0 : index
      %c0_29 = arith.constant 0 : index
      %23 = vector.load %arg7[%c0_27, %c0_28, %c0_29] : memref<1x2x1xf32, #tpu.memory_space<vmem>>, vector<1x2x1xf32>
      tpu.vector_store %arg7[%c0_27, %c0_28, %c0_29], %22 {strides = array<i32>} : memref<1x2x1xf32, #tpu.memory_space<vmem>>, vector<1x2x1xf32>,
    } else {
    }
    %c0 = arith.constant 0 : index
    %c0_1 = arith.constant 0 : index
    %c0_2 = arith.constant 0 : index
    %3 = vector.load %arg3[%c0, %c0_1, %c0_2] : memref<2x8x128xf32, #tpu.memory_space<vmem>>, vector<2x8x128xf32>
    %4 = vector.shape_cast %3 : vector<2x8x128xf32> to vector<16x128xf32>
    %c0_3 = arith.constant 0 : index
    %c0_4 = arith.constant 0 : index
    %5 = vector.load %arg5[%c0_3, %c0_4] : memref<1x128xf32, #tpu.memory_space<vmem>>, vector<1x128xf32>
    %cst = arith.constant dense<0.000000e+00> : vector<16x1xf32>
    %6 = tpu.matmul %4, %5, %cst {dimension_numbers = #tpu.dot_dimension_numbers<[1], [1], [0], [0], [0, 0, 1, 0], [], []>} : vector<16x128xf32>, vector<1x128xf32>, vector<16x1xf32> -> vector<16x1xf32>
    %7 = vector.shape_cast %6 : vector<16x1xf32> to vector<2x8x1xf32>
    %c0_5 = arith.constant 0 : index
    %c0_6 = arith.constant 0 : index
    %c0_7 = arith.constant 0 : index
    %8 = vector.load %arg4[%c0_5, %c0_6, %c0_7] : memref<2x8x1xf32, #tpu.memory_space<vmem>>, vector<2x8x1xf32>
    %c0_8 = arith.constant 0 : index
    %c0_9 = arith.constant 0 : index
    %c0_10 = arith.constant 0 : index
    %9 = vector.load %arg6[%c0_8, %c0_9, %c0_10] : memref<1x2x1xf32, #tpu.memory_space<vmem>>, vector<1x2x1xf32>
    %10 = arith.mulf %7, %8 : vector<2x8x1xf32>
    %cst_11 = arith.constant dense<0.000000e+00> : vector<2x1xf32>
    %11 = vector.multi_reduction <add>, %10, %cst_11 [1] : vector<2x8x1xf32> to vector<2x1xf32>
    %12 = vector.shape_cast %11 : vector<2x1xf32> to vector<1x2x1xf32>
    %13 = arith.addf %9, %12 : vector<1x2x1xf32>
    %c0_12 = arith.constant 0 : index
    %c0_13 = arith.constant 0 : index
    %c0_14 = arith.constant 0 : index
    %14 = vector.load %arg6[%c0_12, %c0_13, %c0_14] : memref<1x2x1xf32, #tpu.memory_space<vmem>>, vector<1x2x1xf32>
    tpu.vector_store %arg6[%c0_12, %c0_13, %c0_14], %13 {strides = array<i32>} : memref<1x2x1xf32, #tpu.memory_space<vmem>>, vector<1x2x1xf32>,
    %c0_15 = arith.constant 0 : index
    %c0_16 = arith.constant 0 : index
    %c0_17 = arith.constant 0 : index
    %15 = vector.load %arg7[%c0_15, %c0_16, %c0_17] : memref<1x2x1xf32, #tpu.memory_space<vmem>>, vector<1x2x1xf32>
    %cst_18 = arith.constant dense<0.000000e+00> : vector<2x1xf32>
    %16 = vector.multi_reduction <add>, %8, %cst_18 [1] : vector<2x8x1xf32> to vector<2x1xf32>
    %17 = vector.shape_cast %16 : vector<2x1xf32> to vector<1x2x1xf32>
    %18 = arith.addf %15, %17 : vector<1x2x1xf32>
    %c0_19 = arith.constant 0 : index
    %c0_20 = arith.constant 0 : index
    %c0_21 = arith.constant 0 : index
    %19 = vector.load %arg7[%c0_19, %c0_20, %c0_21] : memref<1x2x1xf32, #tpu.memory_space<vmem>>, vector<1x2x1xf32>
    tpu.vector_store %arg7[%c0_19, %c0_20, %c0_21], %18 {strides = array<i32>} : memref<1x2x1xf32, #tpu.memory_space<vmem>>, vector<1x2x1xf32>,
    return
  }
  func.func @transform_0(%arg0: i32, %arg1: i32, %arg2: i32) -> (i32, i32, i32) {
    %c1_i32 = arith.constant 1 : i32
    %0 = arith.muli %arg0, %c1_i32 : i32
    %1 = arith.addi %0, %arg2 : i32
    %c0_i32 = arith.constant 0 : i32
    %c0_i32_0 = arith.constant 0 : i32
    return %arg1, %1, %c0_i32 : i32, i32, i32
  }
  func.func @transform_1(%arg0: i32, %arg1: i32, %arg2: i32) -> (i32, i32, i32) {
    %c1_i32 = arith.constant 1 : i32
    %0 = arith.muli %arg0, %c1_i32 : i32
    %1 = arith.addi %0, %arg2 : i32
    %c0_i32 = arith.constant 0 : i32
    %c0_i32_0 = arith.constant 0 : i32
    return %arg1, %1, %c0_i32 : i32, i32, i32
  }
  func.func @transform_2(%arg0: i32, %arg1: i32, %arg2: i32) -> (i32, i32) {
    %c0_i32 = arith.constant 0 : i32
    %c0_i32_0 = arith.constant 0 : i32
    %c0_i32_1 = arith.constant 0 : i32
    return %c0_i32, %c0_i32_0 : i32, i32
  }
  func.func @transform_3(%arg0: i32, %arg1: i32, %arg2: i32) -> (i32, i32, i32) {
    %c0_i32 = arith.constant 0 : i32
    %c0_i32_0 = arith.constant 0 : i32
    return %arg0, %arg1, %c0_i32 : i32, i32, i32
  }
  func.func @transform_4(%arg0: i32, %arg1: i32, %arg2: i32) -> (i32, i32, i32) {
    %c0_i32 = arith.constant 0 : i32
    %c0_i32_0 = arith.constant 0 : i32
    return %arg0, %arg1, %c0_i32 : i32, i32, i32
  }
}

</mosaic_0001>

<bundles_post_ra>
// kernel: tpu_custom_call.1
= control target key start
LH: loop header
LB: loop body
LE: loop exit
PB: predicated region body
PF: predicated region fallthrough
CT: control target
= control target key end

     0   :  { %vm74_vm0 = vcmask 7168   ;;  %vm54_vm1 = vcmask 1024   ;;  %v140_v15 = vmov 0.0   ;;  %vm91_vm2 = vcmask 1041409   ;;  %s209_s0 = inlined_call_operand.vmem [shape: f32[2,8,128], index: 0, kind: input, shape index: {}]   ;;  %s210_s2 = inlined_call_operand.vmem [shape: f32[1,128], index: 2, kind: input, shape index: {}]   ;;  %s211_s1 = inlined_call_operand.vmem [shape: f32[2,8,1], index: 1, kind: input, shape index: {}]   ;;  %s212_s3 = inlined_call_operand.vmem [shape: f32[1,2,1], index: 3, kind: output, shape index: {0}]   ;;  %s213_s4 = inlined_call_operand.vmem [shape: f32[1,2,1], index: 4, kind: output, shape index: {1}]  }
   0x1   :  { %v57_v0 = vld [vmem:[%s209_s0] sm:$0xff]  ;;  %v58_v3 = vld [vmem:[%s209_s0 + $0x8] sm:$0xff]  ;;  %55 = vst.msk [vmem:[%s212_s3] sm:$0x3] %vm54_vm1, %v140_v15 }
   0x2   :  { %v139_v1 = vld [vmem:[%s210_s2] ss:$0 sm:$0xff]  ;;  %v70_v10 = vld [vmem:[%s211_s1 + $0x8] sm:$0xff]  ;;  %56 = vst.msk [vmem:[%s213_s4] sm:$0x3] %vm54_vm1, %v140_v15 }
   0x3   :  { %v63_v2 = vmul.f32 %v139_v1, %v57_v0  ;;  %v64_v4 = vmul.f32 %v139_v1, %v58_v3  ;;  %v69_v5 = vld [vmem:[%s211_s1] sm:$0xff]  ;;  %v105_v11 = vsel %vm74_vm0, %v70_v10, 0.0 }
   0x4   :  { %v98_v6 = vsel %vm74_vm0, %v69_v5, 0.0  ;;  %v106_v13 = vrot.slane %v105_v11, 4 }
   0x5   :  { %65 = vadd.xlane.f32.xlu0 %v63_v2  ;;  %v99_v7 = vrot.slane %v98_v6, 4 }
   0x6   :  { %v107_v14 = vadd.f32 %v106_v13, %v105_v11 }
   0x7   :  { %v100_v8 = vadd.f32 %v99_v7, %v98_v6 }
   0x8   :  { %v108_v17 = vrot.slane %v107_v14, 2  ;;  %v71_v42 = vld [vmem:[%s212_s3] sm:$0x3] }
   0x9   :  { %v101_v9 = vrot.slane %v100_v8, 2  ;;  %v97_v22 = vld [vmem:[%s213_s4] sm:$0x3] }
   0xa   :  { %v109_v18 = vadd.f32 %v108_v17, %v107_v14 }
   0xb   :  { %v102_v12 = vadd.f32 %v101_v9, %v100_v8 }
   0xc   :  { %v110_v20 = vrot.slane %v109_v18, 1 }
   0xd   :  { %67 = vadd.xlane.f32.xlu0 %v64_v4  ;;  %v103_v16 = vrot.slane %v102_v12, 1 }
   0xe   :  { %v111_v21 = vadd.f32 %v110_v20, %v109_v18 }
   0xf   :  { %v104_v19 = vadd.f32 %v103_v16, %v102_v12 }
  0x11   :  { %v114_v23 = vsel %vm91_vm2, %v111_v21, %v104_v19 }
  0x12   :  { %v116_v24 = vadd.f32 %v114_v23, %v97_v22 }
  0x14   :  { %117 = vst.msk [vmem:[%s213_s4] sm:$0x3] %vm54_vm1, %v116_v24 }
  0x78   :  { %v66_v25 = vpop.xlane.xlu0 %65 }
  0x79   :  { %v72_v26 = vmul.f32 %v69_v5, %v66_v25 }
  0x7b   :  { %v75_v27 = vsel %vm74_vm0, %v72_v26, 0.0 }
  0x7c   :  { %v76_v28 = vrot.slane %v75_v27, 4 }
  0x7e   :  { %v77_v29 = vadd.f32 %v76_v28, %v75_v27 }
  0x80   :  { %v68_v30 = vpop.xlane.xlu0 %67  ;;  %v78_v32 = vrot.slane %v77_v29, 2 }
  0x81   :  { %v73_v31 = vmul.f32 %v70_v10, %v68_v30 }
  0x82   :  { %v79_v35 = vadd.f32 %v78_v32, %v77_v29 }
  0x83   :  { %v82_v33 = vsel %vm74_vm0, %v73_v31, 0.0 }
  0x84   :  { %v83_v34 = vrot.slane %v82_v33, 4  ;;  %v80_v38 = vrot.slane %v79_v35, 1 }
  0x86   :  { %v84_v36 = vadd.f32 %v83_v34, %v82_v33  ;;  %v81_v41 = vadd.f32 %v80_v38, %v79_v35 }
  0x88   :  { %v85_v37 = vrot.slane %v84_v36, 2 }
  0x8a   :  { %v86_v39 = vadd.f32 %v85_v37, %v84_v36 }
  0x8c   :  { %v87_v40 = vrot.slane %v86_v39, 1 }
  0x8e   :  { %v88_v43 = vadd.f32 %v87_v40, %v86_v39 }
  0x90   :  { %v92_v44 = vsel %vm91_vm2, %v88_v43, %v81_v41 }
  0x91   :  { %v94_v45 = vadd.f32 %v92_v44, %v71_v42 }
  0x93   :  { %96 = vst.msk [vmem:[%s212_s3] sm:$0x3] %vm54_vm1, %v94_v45 }

</bundles_post_ra>
